<compile_context>
chip_gen: v6e
topology: v6e:2x2x1
jax: 0.10.0
libtpu: 0.0.40
codegen_flags: <defaults>
</compile_context>

<pallas_src>
import jax
import jax.numpy as jnp
from jax.experimental import pallas as pl
from jax.experimental.pallas import tpu as pltpu

# ~2 MiB per block: with input+output double-buffered (~4x block bytes) this
# stays far below the 16 MiB scoped-VMEM default on v5e and the 32 MiB default
# on v6e/v7x, while being large enough to hit ~85% of HBM roofline.
_TARGET_BLOCK_BYTES = 2 * 1024 * 1024


def _round_up(x, m):
    return (x + m - 1) // m * m


def _add_bias_2d_kernel(x_ref, b_ref, o_ref):
    # x_ref: (TM, F), b_ref: (1, F) -> broadcast add over rows
    o_ref[...] = x_ref[...] + b_ref[...]


def _add_bias_3d_kernel(x_ref, b_ref, o_ref):
    # x_ref: (BN, C, L), b_ref: (1, C, 1) -> broadcast add over batch & spatial
    o_ref[...] = x_ref[...] + b_ref[...]


def _add_bias_2d_pallas(x, b_row):
    n, f = x.shape
    itemsize = jnp.dtype(x.dtype).itemsize

    # Row tile targeting ~_TARGET_BLOCK_BYTES; keep sublane dim a multiple of 8
    # (or equal to the full extent) so the BlockSpec is always legal.
    tm = max(1, _TARGET_BLOCK_BYTES // max(1, f * itemsize))
    if tm >= n:
        tm = n
    else:
        tm = max(8, (tm // 8) * 8)
        tm = min(tm, n)

    grid = (pl.cdiv(n, tm),)
    return pl.pallas_call(
        _add_bias_2d_kernel,
        out_shape=jax.ShapeDtypeStruct((n, f), x.dtype),
        grid=grid,
        in_specs=[
            pl.BlockSpec((tm, f), lambda i: (i, 0)),
            pl.BlockSpec((1, f), lambda i: (0, 0)),   # bias stays resident
        ],
        out_specs=pl.BlockSpec((tm, f), lambda i: (i, 0)),
        compiler_params=pltpu.CompilerParams(
            dimension_semantics=("parallel",)),
    )(x, b_row)


def _add_bias_4d_pallas(x, bias_param):
    n, c, h, w = x.shape
    hw = h * w
    itemsize = jnp.dtype(x.dtype).itemsize

    # Lane-dense layout: collapse spatial dims to the last axis and pad it to a
    # multiple of 128 so every store is a full (unmasked) lane write.
    l = _round_up(hw, 128)
    x3 = x.reshape(n, c, hw)
    if l != hw:
        x3 = jnp.pad(x3, ((0, 0), (0, 0), (0, l - hw)))
    b3 = bias_param.reshape(1, c, 1)

    # Several batch elements per grid step, targeting ~2 MiB blocks.
    per_batch = c * l * itemsize
    bn = max(1, _TARGET_BLOCK_BYTES // per_batch)
    bn = min(bn, n)

    grid = (pl.cdiv(n, bn),)
    out3 = pl.pallas_call(
        _add_bias_3d_kernel,
        out_shape=jax.ShapeDtypeStruct((n, c, l), x.dtype),
        grid=grid,
        in_specs=[
            pl.BlockSpec((bn, c, l), lambda i: (i, 0, 0)),
            pl.BlockSpec((1, c, 1), lambda i: (0, 0, 0)),  # bias resident
        ],
        out_specs=pl.BlockSpec((bn, c, l), lambda i: (i, 0, 0)),
        compiler_params=pltpu.CompilerParams(
            dimension_semantics=("parallel",)),
    )(x3, b3)

    if l != hw:
        out3 = out3[:, :, :hw]           # slice padded lanes back off
    return out3.reshape(n, c, h, w)


def add_bias(x, bias_param, *, min_pallas_bytes=1 << 15):
    """Pallas equivalent of AddBias.forward.

    bias_param has shape (C, 1), mirroring nn.Parameter(bias.unsqueeze(1)).
    Tensors smaller than `min_pallas_bytes` fall back to plain JAX (XLA fuses
    the broadcast add; a pallas_call would be launch-overhead dominated).
    Pass min_pallas_bytes=0 to force the Pallas path.
    """
    b = bias_param.astype(x.dtype)
    nbytes = x.size * jnp.dtype(x.dtype).itemsize

    if x.ndim == 2:
        n, f = x.shape
        b_row = b.T.reshape(1, f)                 # glue: parameter reshape
        if nbytes < min_pallas_bytes:
            return x + b_row
        return _add_bias_2d_pallas(x, b_row)
    elif x.ndim == 4:
        n, c, h, w = x.shape
        if nbytes < min_pallas_bytes:
            return x + b.T.reshape(1, c, 1, 1)
        return _add_bias_4d_pallas(x, b)
    else:
        raise ValueError("AddBias expects 2-D or 4-D input")


if __name__ == "__main__":
    key = jax.random.PRNGKey(0)
    kb, kx4, kx2, kx4b, kx2b = jax.random.split(key, 5)

    C = 4
    # Deterministic parameter init: bias vector (C,), stored as (C, 1)
    # exactly like nn.Parameter(bias.unsqueeze(1)).
    bias_vec = jax.random.normal(kb, (C,), dtype=jnp.float32)
    bias_param = bias_vec[:, None]  # (C, 1)

    # --- 4-D NCHW input (small, forced through the Pallas path) -------------
    x4 = jax.random.normal(kx4, (2, C, 16, 16), dtype=jnp.float32)
    y4 = jax.block_until_ready(add_bias(x4, bias_param, min_pallas_bytes=0))
    ref4 = x4 + bias_param.T.reshape(1, C, 1, 1)
    assert y4.shape == x4.shape and y4.dtype == x4.dtype
    assert jnp.allclose(y4, ref4, atol=1e-6), "4-D mismatch"

    # Default dispatch (small tensor -> plain-JAX fallback) must agree too.
    y4_fb = jax.block_until_ready(add_bias(x4, bias_param))
    assert jnp.allclose(y4_fb, ref4, atol=1e-6), "4-D fallback mismatch"

    # --- 4-D with H*W not a multiple of 128 (exercises lane padding) --------
    x4p = jax.random.normal(kx4b, (2, C, 5, 5), dtype=jnp.float32)
    y4p = jax.block_until_ready(add_bias(x4p, bias_param, min_pallas_bytes=0))
    ref4p = x4p + bias_param.T.reshape(1, C, 1, 1)
    assert jnp.allclose(y4p, ref4p, atol=1e-6), "4-D padded mismatch"

    # --- 2-D input (small, forced through the Pallas path) ------------------
    x2 = jax.random.normal(kx2, (2, C), dtype=jnp.float32)
    y2 = jax.block_until_ready(add_bias(x2, bias_param, min_pallas_bytes=0))
    ref2 = x2 + bias_param.T.reshape(1, C)
    assert y2.shape == x2.shape and y2.dtype == x2.dtype
    assert jnp.allclose(y2, ref2, atol=1e-6), "2-D mismatch"

    # --- 2-D input large enough to exercise row tiling (grid > 1) -----------
    F_big = 256
    bias_big = jax.random.normal(kb, (F_big,), dtype=jnp.float32)[:, None]
    x2b = jax.random.normal(kx2b, (4096, F_big), dtype=jnp.float32)
    y2b = jax.block_until_ready(add_bias(x2b, bias_big, min_pallas_bytes=0))
    ref2b = x2b + bias_big.T.reshape(1, F_big)
    assert jnp.allclose(y2b, ref2b, atol=1e-6), "2-D tiled mismatch"

    print("KERNEL_OK")
</pallas_src>

<mosaic_0001>
module attributes {stable_mosaic.version = 11 : i64} {
  func.func @_add_bias_3d_kernel(%arg0: i32, %arg1: memref<2x4x256xf32, #tpu.memory_space<vmem>>, %arg2: memref<1x4x1xf32, #tpu.memory_space<vmem>>, %arg3: memref<2x4x256xf32, #tpu.memory_space<vmem>>) attributes {dimension_semantics = [#tpu.dimension_semantics<parallel>], iteration_bounds = array<i64: 1>, scalar_prefetch = 0 : i64, scratch_operands = 0 : i64, tpu.core_type = #tpu.core_type<tc>, window_params = [{transform_indices = @transform_0, window_bounds = array<i64: 2, 4, 256>}, {pipeline_mode = #tpu.pipeline_mode<synchronous>, transform_indices = @transform_1, window_bounds = array<i64: 1, 4, 1>}, {transform_indices = @transform_2, window_bounds = array<i64: 2, 4, 256>}]} {
    %c0 = arith.constant 0 : index
    %c0_0 = arith.constant 0 : index
    %c0_1 = arith.constant 0 : index
    %0 = vector.load %arg1[%c0, %c0_0, %c0_1] : memref<2x4x256xf32, #tpu.memory_space<vmem>>, vector<2x4x256xf32>
    %c0_2 = arith.constant 0 : index
    %c0_3 = arith.constant 0 : index
    %c0_4 = arith.constant 0 : index
    %1 = vector.load %arg2[%c0_2, %c0_3, %c0_4] : memref<1x4x1xf32, #tpu.memory_space<vmem>>, vector<1x4x1xf32>
    %2 = vector.broadcast %1 : vector<1x4x1xf32> to vector<2x4x256xf32>
    %3 = arith.addf %0, %2 : vector<2x4x256xf32>
    %c0_5 = arith.constant 0 : index
    %c0_6 = arith.constant 0 : index
    %c0_7 = arith.constant 0 : index
    %4 = vector.load %arg3[%c0_5, %c0_6, %c0_7] : memref<2x4x256xf32, #tpu.memory_space<vmem>>, vector<2x4x256xf32>
    tpu.vector_store %arg3[%c0_5, %c0_6, %c0_7], %3 {strides = array<i32>} : memref<2x4x256xf32, #tpu.memory_space<vmem>>, vector<2x4x256xf32>,
    return
  }
  func.func @transform_0(%arg0: i32) -> (i32, i32, i32) {
    %c0_i32 = arith.constant 0 : i32
    %c0_i32_0 = arith.constant 0 : i32
    %c0_i32_1 = arith.constant 0 : i32
    return %arg0, %c0_i32, %c0_i32_0 : i32, i32, i32
  }
  func.func @transform_1(%arg0: i32) -> (i32, i32, i32) {
    %c0_i32 = arith.constant 0 : i32
    %c0_i32_0 = arith.constant 0 : i32
    %c0_i32_1 = arith.constant 0 : i32
    %c0_i32_2 = arith.constant 0 : i32
    return %c0_i32, %c0_i32_0, %c0_i32_1 : i32, i32, i32
  }
  func.func @transform_2(%arg0: i32) -> (i32, i32, i32) {
    %c0_i32 = arith.constant 0 : i32
    %c0_i32_0 = arith.constant 0 : i32
    %c0_i32_1 = arith.constant 0 : i32
    return %arg0, %c0_i32, %c0_i32_0 : i32, i32, i32
  }
}

</mosaic_0001>

<bundles_post_ra>
// kernel: tpu_custom_call.1
= control target key start
LH: loop header
LB: loop body
LE: loop exit
PB: predicated region body
PF: predicated region fallthrough
CT: control target
= control target key end

     0   :  { %7 = vsyncpa [#allocation3], 0  ;;  %s149_s0 = inlined_call_operand.hbm [shape: f32[2,4,256], index: 0, kind: input, shape index: {}]   ;;  %s150_s1 = inlined_call_operand.vmem [shape: f32[1,4,1], index: 1, kind: input, shape index: {}]   ;;  %s151_s2 = inlined_call_operand.hbm [shape: f32[2,4,256], index: 2, kind: output, shape index: {}]  }
   0x1   :  { %8 = vsyncpa [#allocation4], 0  ;;  %s113_s9 = smov [#allocation2]  }
   0x2   :  { %s14_s10 = sshll.u32 %s113_s9, 4  ;;  %s15_s10 = int_to_ptr.vmem [resolvable:$true] %s14_s10 }
   0x3   :  { %s77_s11 = scalar_lea.vmem %s15_s10, 256  ;;  %p82_p1 = scmp.lt.s32.totalorder %s15_s10, %s15_s10 }
   0x4   :  { %p78_p0 = scmp.ne.s32.totalorder %s15_s10, %s77_s11  ;;  %p83_p2 = scmp.lt.s32.totalorder %s77_s11, %s77_s11 }
   0x6   :  { %p84_p3 = por %p83_p2, %p82_p1 }
   0x8   :  { %p85_p4 = pnand %p84_p3, %p78_p0 }
   0xa   :  { %88 = shalt.err (!%p85_p4)
}
   0xb   :  { %s114_s12 = smov 128   ;;  %s115_s13 = smov 8  }
   0xc   :  { %20 = dma.hbm_to_vmem [thread:$0]  %s149_s0, 256, %s15_s10, [#allocation3], %s114_s12, %s114_s12, %s115_s13  }
   0xd   :  { %109 = dma.done.wait [#allocation3], 256  }
   0xe   :  { %110 = vsyncadd [#allocation3], 4294967040  ;;  %v116_v0 = vmov 0   ;;  %v28_v1 = vld [vmem:[%s150_s1] sm:$0xf]  ;;  %v36_v4 = vlaneseq  ;;  %v27_v10 = vld [vmem:[#allocation2 + $0x8] sm:$0xff] }
   0xf   :  { %68 = vset.pattern.permute.xlu0 %v116_v0  ;;  %v117_v2 = vmov 839922192   ;;  %v26_v9 = vld [vmem:[#allocation2] sm:$0xff]  ;;  %s118_s18 = smov [#allocation5]  }
  0x10   :  { %31 = vperm.xlu0 %68, %v28_v1   ;;  %v34_v3 = vunpack.c.l.s4 %v117_v2  ;;  %v37_v6 = vshrl.u32 %v36_v4, 7  ;;  %s50_s0 = sshll.u32 %s118_s18, 4  ;;  %s51_s0 = int_to_ptr.vmem [resolvable:$true] %s50_s0 }
  0x11   :  { %s89_s19 = scalar_lea.vmem %s51_s0, 256  ;;  %p94_p6 = scmp.lt.s32.totalorder %s51_s0, %s51_s0 }
  0x12   :  { %v35_v5 = vunpack.c.0.s8 %v34_v3  ;;  %p90_p5 = scmp.ne.s32.totalorder %s51_s0, %s89_s19  ;;  %p95_p7 = scmp.lt.s32.totalorder %s89_s19, %s89_s19 }
  0x14   :  { %v38_v7 = vsub.s32 %v35_v5, %v37_v6  ;;  %p96_p8 = por %p95_p7, %p94_p6 }
  0x16   :  { %p97_p9 = pnand %p96_p8, %p90_p5 }
  0x8b   :  { %v32_v8 = vpop.permute.xlu0 %31 }
  0x8c   :  { %v39_v11 = vrot.slane %v32_v8, %v38_v7 }
  0x8e   :  { %v41_v12 = vadd.f32 %v39_v11, %v26_v9  ;;  %v42_v13 = vadd.f32 %v39_v11, %v27_v10 }
  0x90   :  { %43 = vst [vmem:[#allocation5] sm:$0xff] %v41_v12  ;;  %44 = vst [vmem:[#allocation5 + $0x8] sm:$0xff] %v42_v13 }
  0x91   :  { %100 = shalt.err (!%p97_p9)
}
  0x92   :  { %56 = dma.vmem_to_hbm [thread:$0]  %s51_s0, 256, %s151_s2, [#allocation4], %s114_s12, %s114_s12, %s115_s13  }
  0x93   :  { %111 = dma.done.wait [#allocation4], 256  }
  0x94   :  { %112 = vsyncadd [#allocation4], 4294967040 }
  0x95   :  { %60 = vsyncpa [#allocation3], 1 }
  0x96   :  { %61 = vsyncpa [#allocation4], 1 }

</bundles_post_ra>
